<compile_context>
chip_gen: v7x
topology: tpu7x:2x2x1
jax: 0.10.0
libtpu: 0.0.40
codegen_flags: <defaults>
</compile_context>

<pallas_src>
import jax
import jax.numpy as jnp
from jax import lax
from jax.experimental import pallas as pl
from jax.experimental.pallas import tpu as pltpu

LN_EPS = 1e-5


def _gc_kernel(x_ref, wk_ref, bk_ref, wv1b_ref, wv2b_ref, ln_ref, o_ref, ctx_ref):
    # x_ref / o_ref : (nb, C, S)  — channels on sublanes, spatial on lanes.
    # wk_ref        : (1, C)
    # bk_ref        : (1, 1) in SMEM (scalar bias of the mask conv)
    # wv1b_ref      : (Cr, C+1)  = [w_v1 | b_v1]
    # wv2b_ref      : (C, Cr+1)  = [w_v2 | b_v2]
    # ln_ref        : (Cr, 2)    = [gamma | beta]
    # ctx_ref       : VMEM scratch (nb, C+1); row b holds [ctx_b , 1]
    nb, C, S = x_ref.shape
    Cr = wv1b_ref.shape[0]

    bk = bk_ref[0, 0]
    wk = wk_ref[...]                                   # (1, C)

    # Augmented "ones" column so that wv1b @ ctx_aug^T includes the b_v1 bias for free.
    ctx_ref[:, C:C + 1] = jnp.ones((nb, 1), jnp.float32)

    # ---- Phase 1: per-image attention pooling (nothing from image b stays live). ----
    for b in range(nb):                                # static unroll, nb small (<= 8)
        xb = x_ref[b]                                  # (C, S)
        # 1x1 conv C->1 as (1,C)@(C,S) -> lane-dense (1,S); softmax over lanes.
        logits = jnp.dot(wk, xb, preferred_element_type=jnp.float32) + bk     # (1, S)
        m = jnp.max(logits, axis=-1, keepdims=True)
        p = jnp.exp(logits - m)                        # unnormalized probs (1, S)
        denom = jnp.sum(p, axis=-1, keepdims=True)     # (1, 1)
        # Deferred normalization: contract p against x over S on the MXU, then scale
        # the (1, C) result by 1/denom (exact reciprocal — one divide per image).
        ctx_row = lax.dot_general(p, xb, (((1,), (1,)), ((), ())),
                                  preferred_element_type=jnp.float32)          # (1, C)
        ctx_ref[b:b + 1, 0:C] = ctx_row * pl.reciprocal(denom)

    # ---- Phase 2: ONE batched transform across all nb contexts. ----
    ctx_aug = ctx_ref[...]                                                      # (nb, C+1)
    h = lax.dot_general(wv1b_ref[...], ctx_aug, (((1,), (1,)), ((), ())),
                        preferred_element_type=jnp.float32)                     # (Cr, nb)
    mu = jnp.mean(h, axis=0, keepdims=True)                                     # (1, nb)
    var = jnp.mean((h - mu) ** 2, axis=0, keepdims=True)
    h = (h - mu) * lax.rsqrt(var + LN_EPS)
    lnv = ln_ref[...]                                                           # (Cr, 2)
    h = h * lnv[:, 0:1] + lnv[:, 1:2]                                           # gamma, beta
    h = jnp.maximum(h, 0.0)                                                     # ReLU
    wv2bv = wv2b_ref[...]                                                       # (C, Cr+1)
    t = jnp.dot(wv2bv[:, 0:Cr], h, preferred_element_type=jnp.float32) \
        + wv2bv[:, Cr:Cr + 1]                                                   # (C, nb)

    # ---- Phase 3: residual add (re-reads x from VMEM; loads are cheap). ----
    for b in range(nb):
        o_ref[b] = (x_ref[b] + t[:, b:b + 1]).astype(o_ref.dtype)


def _vmem_capacity_bytes():
    """Physical VMEM capacity of the current chip; conservative fallback (v7x)."""
    try:
        info = pltpu.get_tpu_info()
        cap = getattr(info, "vmem_capacity_bytes", None)
        if cap:
            return int(cap)
    except Exception:
        pass
    return 64 << 20


def _pick_batch_block(n, per_image_bytes, max_nb, max_block_bytes):
    """Pick images-per-grid-step: fewest grid steps subject to the block budget,
    keeping >= 2 steps when n >= 2 (so both v7x TensorCores get work); ties broken
    toward exact divisors of n (no padding)."""
    min_steps = 2 if n >= 2 else 1
    best, best_steps = 1, n
    for nb in range(1, min(n, max_nb) + 1):
        if nb * per_image_bytes > max_block_bytes:
            break
        steps = -(-n // nb)
        if steps < min_steps:
            continue
        if steps < best_steps or (steps == best_steps and n % nb == 0 and n % best != 0):
            best, best_steps = nb, steps
    return best


def global_context_block(x_nchw, params, *, max_batch_block=8):
    """x_nchw: (N, C, H, W) float32."""
    N, C, H, W = x_nchw.shape
    S = H * W
    Cr = params["wv1"].shape[0]

    # NCHW -> (N, C, S) is a free, contiguous reshape (no HBM traffic).
    x = x_nchw.reshape(N, C, S)
    itemsize = x.dtype.itemsize

    cap = _vmem_capacity_bytes()
    # ~45% of physical VMEM for the 4 live block buffers (in + out, double-buffered).
    max_block_bytes = max(1 << 20, int(cap * 0.45) // 4)
    per_image_bytes = C * S * itemsize
    nb = _pick_batch_block(N, per_image_bytes, max_batch_block, max_block_bytes)

    # Pad N to a multiple of nb (padded rows are computed on zeros and discarded).
    n_pad = ((N + nb - 1) // nb) * nb
    if n_pad != N:
        x = jnp.concatenate([x, jnp.zeros((n_pad - N, C, S), x.dtype)], axis=0)

    block_bytes = nb * per_image_bytes
    needed = 4 * block_bytes + (4 << 20)          # 2x in + 2x out buffers + weights/headroom
    vmem_limit = int(min(max(needed, 16 << 20), int(cap * 0.9)))
    # TODO(synk): if needed > 0.9*cap (very large per-image slabs) switch to a spatially
    # tiled two-phase path (online-softmax ctx accumulation + streaming residual pass).

    # Consolidated small parameters (fewer DMA'd inputs per pipeline stage).
    wv1b = jnp.concatenate([params["wv1"], params["bv1"]], axis=1)     # (Cr, C+1)
    wv2b = jnp.concatenate([params["wv2"], params["bv2"]], axis=1)     # (C, Cr+1)
    lnp = jnp.concatenate([params["gamma"], params["beta"]], axis=1)   # (Cr, 2)

    cost = pl.CostEstimate(
        flops=int(N * (5 * C * S + 2 * S + 2 * Cr * (C + 1) + 2 * C * (Cr + 1))),
        transcendentals=int(N * S),
        bytes_accessed=int(2 * N * C * S * itemsize),
    )

    out = pl.pallas_call(
        _gc_kernel,
        out_shape=jax.ShapeDtypeStruct((n_pad, C, S), x.dtype),
        grid_spec=pltpu.PrefetchScalarGridSpec(
            num_scalar_prefetch=0,
            grid=(n_pad // nb,),
            in_specs=[
                pl.BlockSpec((nb, C, S), lambda i: (i, 0, 0)),            # x
                pl.BlockSpec((1, C), lambda i: (0, 0)),                   # w_k
                pl.BlockSpec(memory_space=pltpu.MemorySpace.SMEM),        # b_k scalar
                pl.BlockSpec((Cr, C + 1), lambda i: (0, 0)),              # [w_v1 | b_v1]
                pl.BlockSpec((C, Cr + 1), lambda i: (0, 0)),              # [w_v2 | b_v2]
                pl.BlockSpec((Cr, 2), lambda i: (0, 0)),                  # [gamma | beta]
            ],
            out_specs=pl.BlockSpec((nb, C, S), lambda i: (i, 0, 0)),
            scratch_shapes=[pltpu.VMEM((nb, C + 1), jnp.float32)],        # ctx columns
        ),
        compiler_params=pltpu.CompilerParams(
            dimension_semantics=("parallel",),
            vmem_limit_bytes=vmem_limit,
        ),
        cost_estimate=cost,
    )(x, params["wk"], params["bk"], wv1b, wv2b, lnp)

    if n_pad != N:
        out = out[:N]
    return out.reshape(N, C, H, W)


def make_params(key, in_channels, reduction=16):
    """Deterministic synthetic params matching the module's shapes/init style."""
    C = in_channels
    Cr = C // reduction
    k1, k2, k3, k4, k5, k6 = jax.random.split(key, 6)

    # Kaiming-normal (fan_out, relu) for the 1x1 conv weights, like init_weights().
    wk_conv = jax.random.normal(k1, (1, C), jnp.float32) * jnp.sqrt(2.0 / 1)     # (out=1, in=C)
    wv1_conv = jax.random.normal(k2, (Cr, C), jnp.float32) * jnp.sqrt(2.0 / Cr)  # (out=Cr, in=C)
    wv2_conv = jax.random.normal(k3, (C, Cr), jnp.float32) * jnp.sqrt(2.0 / C)   # (out=C, in=Cr)

    # Conv biases: PyTorch default U(-1/sqrt(fan_in), 1/sqrt(fan_in)).
    bk = jax.random.uniform(k4, (1, 1), jnp.float32, -1.0, 1.0) / jnp.sqrt(C)
    bv1 = jax.random.uniform(k5, (Cr, 1), jnp.float32, -1.0, 1.0) / jnp.sqrt(C)
    bv2 = jax.random.uniform(k6, (C, 1), jnp.float32, -1.0, 1.0) / jnp.sqrt(Cr)

    return {
        "wk": wk_conv,                               # (1, C)
        "bk": bk,                                    # (1, 1)
        "wv1": wv1_conv,                             # (Cr, C)
        "bv1": bv1,                                  # (Cr, 1)
        "wv2": wv2_conv,                             # (C, Cr)
        "bv2": bv2,                                  # (C, 1)
        "gamma": jnp.ones((Cr, 1), jnp.float32),     # LayerNorm weight (init ones)
        "beta": jnp.zeros((Cr, 1), jnp.float32),     # LayerNorm bias (init zeros)
    }


def reference(x_nchw, params):
    """Pure-JAX reference matching the PyTorch forward exactly."""
    N, C, H, W = x_nchw.shape
    S = H * W
    xf = x_nchw.reshape(N, C, S)
    wk = params["wk"][0]                              # (C,)
    logits = jnp.einsum("c,ncs->ns", wk, xf) + params["bk"][0, 0]
    attn = jax.nn.softmax(logits, axis=-1)            # (N, S)
    context = jnp.einsum("ncs,ns->nc", xf, attn)      # (N, C)
    h = context @ params["wv1"].T + params["bv1"][:, 0]   # (N, Cr)
    mu = h.mean(-1, keepdims=True)
    var = ((h - mu) ** 2).mean(-1, keepdims=True)
    h = (h - mu) / jnp.sqrt(var + LN_EPS)
    h = h * params["gamma"][:, 0] + params["beta"][:, 0]
    h = jnp.maximum(h, 0.0)
    t = h @ params["wv2"].T + params["bv2"][:, 0]     # (N, C)
    return x_nchw + t[:, :, None, None]


if __name__ == "__main__":
    key = jax.random.PRNGKey(0)
    kx, kp = jax.random.split(key)

    N, C, H, W = 2, 32, 16, 16       # in_channels=32, reduction=16 -> Cr=2, S=256
    x = jax.random.normal(kx, (N, C, H, W), jnp.float32)
    params = make_params(kp, in_channels=C, reduction=16)

    z = global_context_block(x, params)
    z = jax.block_until_ready(z)

    z_ref = reference(x, params)
    assert z.shape == (N, C, H, W)
    assert jnp.allclose(z, z_ref, rtol=1e-4, atol=1e-4), "mismatch vs reference"

    print("KERNEL_OK")
</pallas_src>

<mosaic_0001>
module attributes {stable_mosaic.version = 11 : i64} {
  func.func @_gc_kernel(%arg0: i32, %arg1: memref<1x32x256xf32, #tpu.memory_space<vmem>>, %arg2: memref<1x32xf32, #tpu.memory_space<vmem>>, %arg3: memref<1x1xf32, #tpu.memory_space<smem>>, %arg4: memref<2x33xf32, #tpu.memory_space<vmem>>, %arg5: memref<32x3xf32, #tpu.memory_space<vmem>>, %arg6: memref<2x2xf32, #tpu.memory_space<vmem>>, %arg7: memref<1x32x256xf32, #tpu.memory_space<vmem>>, %arg8: memref<1x33xf32, #tpu.memory_space<vmem>>) attributes {dimension_semantics = [#tpu.dimension_semantics<parallel>], iteration_bounds = array<i64: 2>, scalar_prefetch = 0 : i64, scratch_operands = 1 : i64, tpu.core_type = #tpu.core_type<tc>, window_params = [{transform_indices = @transform_0, window_bounds = array<i64: 1, 32, 256>}, {pipeline_mode = #tpu.pipeline_mode<synchronous>, transform_indices = @transform_1, window_bounds = array<i64: 1, 32>}, {transform_indices = @transform_2, window_bounds = array<i64: 1, 1>}, {pipeline_mode = #tpu.pipeline_mode<synchronous>, transform_indices = @transform_3, window_bounds = array<i64: 2, 33>}, {pipeline_mode = #tpu.pipeline_mode<synchronous>, transform_indices = @transform_4, window_bounds = array<i64: 32, 3>}, {pipeline_mode = #tpu.pipeline_mode<synchronous>, transform_indices = @transform_5, window_bounds = array<i64: 2, 2>}, {transform_indices = @transform_6, window_bounds = array<i64: 1, 32, 256>}]} {
    %c0 = arith.constant 0 : index
    %c0_0 = arith.constant 0 : index
    %0 = memref.load %arg3[%c0, %c0_0] : memref<1x1xf32, #tpu.memory_space<smem>>
    %c0_1 = arith.constant 0 : index
    %c0_2 = arith.constant 0 : index
    %1 = vector.load %arg2[%c0_1, %c0_2] : memref<1x32xf32, #tpu.memory_space<vmem>>, vector<1x32xf32>
    %cst = arith.constant 1.000000e+00 : f32
    %2 = vector.broadcast %cst : f32 to vector<1x1xf32>
    %c0_3 = arith.constant 0 : index
    %c32 = arith.constant 32 : index
    %3 = vector.load %arg8[%c0_3, %c32] : memref<1x33xf32, #tpu.memory_space<vmem>>, vector<1x1xf32>
    tpu.vector_store %arg8[%c0_3, %c32], %2 {strides = array<i32>} : memref<1x33xf32, #tpu.memory_space<vmem>>, vector<1x1xf32>,
    %c0_4 = arith.constant 0 : index
    %c0_5 = arith.constant 0 : index
    %c0_6 = arith.constant 0 : index
    %4 = vector.load %arg1[%c0_4, %c0_5, %c0_6] : memref<1x32x256xf32, #tpu.memory_space<vmem>>, vector<1x32x256xf32>
    %5 = vector.shape_cast %4 : vector<1x32x256xf32> to vector<32x256xf32>
    %cst_7 = arith.constant dense<0.000000e+00> : vector<1x256xf32>
    %6 = tpu.matmul %1, %5, %cst_7 {dimension_numbers = #tpu.dot_dimension_numbers<[1], [0], [0], [1], [0, 0, 1, 1], [], []>} : vector<1x32xf32>, vector<32x256xf32>, vector<1x256xf32> -> vector<1x256xf32>
    %7 = vector.broadcast %0 : f32 to vector<1x256xf32>
    %8 = arith.addf %6, %7 : vector<1x256xf32>
    %cst_8 = arith.constant dense<0xFF800000> : vector<1xf32>
    %9 = vector.multi_reduction <maximumf>, %8, %cst_8 [1] : vector<1x256xf32> to vector<1xf32>
    %10 = vector.shape_cast %9 : vector<1xf32> to vector<1x1xf32>
    %11 = vector.broadcast %10 : vector<1x1xf32> to vector<1x256xf32>
    %12 = arith.subf %8, %11 : vector<1x256xf32>
    %13 = math.exp %12 : vector<1x256xf32>
    %cst_9 = arith.constant dense<0.000000e+00> : vector<1xf32>
    %14 = vector.multi_reduction <add>, %13, %cst_9 [1] : vector<1x256xf32> to vector<1xf32>
    %15 = vector.shape_cast %14 : vector<1xf32> to vector<1x1xf32>
    %cst_10 = arith.constant dense<0.000000e+00> : vector<1x32xf32>
    %16 = tpu.matmul %13, %5, %cst_10 {dimension_numbers = #tpu.dot_dimension_numbers<[1], [1], [0], [0], [0, 0, 1, 0], [], []>} : vector<1x256xf32>, vector<32x256xf32>, vector<1x32xf32> -> vector<1x32xf32>
    %17 = tpu.reciprocal %15 : vector<1x1xf32> -> vector<1x1xf32>
    %18 = vector.broadcast %17 : vector<1x1xf32> to vector<1x32xf32>
    %19 = arith.mulf %16, %18 : vector<1x32xf32>
    %c0_11 = arith.constant 0 : index
    %c0_12 = arith.constant 0 : index
    %20 = vector.load %arg8[%c0_11, %c0_12] : memref<1x33xf32, #tpu.memory_space<vmem>>, vector<1x32xf32>
    tpu.vector_store %arg8[%c0_11, %c0_12], %19 {strides = array<i32>} : memref<1x33xf32, #tpu.memory_space<vmem>>, vector<1x32xf32>,
    %c0_13 = arith.constant 0 : index
    %c0_14 = arith.constant 0 : index
    %21 = vector.load %arg8[%c0_13, %c0_14] : memref<1x33xf32, #tpu.memory_space<vmem>>, vector<1x33xf32>
    %c0_15 = arith.constant 0 : index
    %c0_16 = arith.constant 0 : index
    %22 = vector.load %arg4[%c0_15, %c0_16] : memref<2x33xf32, #tpu.memory_space<vmem>>, vector<2x33xf32>
    %cst_17 = arith.constant dense<0.000000e+00> : vector<2x1xf32>
    %23 = tpu.matmul %22, %21, %cst_17 {dimension_numbers = #tpu.dot_dimension_numbers<[1], [1], [0], [0], [0, 0, 1, 0], [], []>} : vector<2x33xf32>, vector<1x33xf32>, vector<2x1xf32> -> vector<2x1xf32>
    %cst_18 = arith.constant dense<0.000000e+00> : vector<1xf32>
    %24 = vector.multi_reduction <add>, %23, %cst_18 [0] : vector<2x1xf32> to vector<1xf32>
    %25 = vector.shape_cast %24 : vector<1xf32> to vector<1x1xf32>
    %cst_19 = arith.constant 2.000000e+00 : f32
    %26 = vector.broadcast %cst_19 : f32 to vector<1x1xf32>
    %27 = arith.divf %25, %26 : vector<1x1xf32>
    %28 = vector.broadcast %27 : vector<1x1xf32> to vector<2x1xf32>
    %29 = arith.subf %23, %28 : vector<2x1xf32>
    %30 = arith.mulf %29, %29 : vector<2x1xf32>
    %cst_20 = arith.constant dense<0.000000e+00> : vector<1xf32>
    %31 = vector.multi_reduction <add>, %30, %cst_20 [0] : vector<2x1xf32> to vector<1xf32>
    %32 = vector.shape_cast %31 : vector<1xf32> to vector<1x1xf32>
    %cst_21 = arith.constant 2.000000e+00 : f32
    %33 = vector.broadcast %cst_21 : f32 to vector<1x1xf32>
    %34 = arith.divf %32, %33 : vector<1x1xf32>
    %35 = vector.broadcast %27 : vector<1x1xf32> to vector<2x1xf32>
    %36 = arith.subf %23, %35 : vector<2x1xf32>
    %cst_22 = arith.constant 9.99999974E-6 : f32
    %37 = vector.broadcast %cst_22 : f32 to vector<1x1xf32>
    %38 = arith.addf %34, %37 : vector<1x1xf32>
    %39 = math.rsqrt %38 : vector<1x1xf32>
    %40 = vector.broadcast %39 : vector<1x1xf32> to vector<2x1xf32>
    %41 = arith.mulf %36, %40 : vector<2x1xf32>
    %c0_23 = arith.constant 0 : index
    %c0_24 = arith.constant 0 : index
    %42 = vector.load %arg6[%c0_23, %c0_24] : memref<2x2xf32, #tpu.memory_space<vmem>>, vector<2x2xf32>
    %43 = vector.extract_strided_slice %42 {offsets = [0, 0], sizes = [2, 1], strides = [1, 1]} : vector<2x2xf32> to vector<2x1xf32>
    %44 = arith.mulf %41, %43 : vector<2x1xf32>
    %45 = vector.extract_strided_slice %42 {offsets = [0, 1], sizes = [2, 1], strides = [1, 1]} : vector<2x2xf32> to vector<2x1xf32>
    %46 = arith.addf %44, %45 : vector<2x1xf32>
    %cst_25 = arith.constant 0.000000e+00 : f32
    %47 = vector.broadcast %cst_25 : f32 to vector<2x1xf32>
    %48 = arith.maximumf %46, %47 : vector<2x1xf32>
    %c0_26 = arith.constant 0 : index
    %c0_27 = arith.constant 0 : index
    %49 = vector.load %arg5[%c0_26, %c0_27] : memref<32x3xf32, #tpu.memory_space<vmem>>, vector<32x3xf32>
    %50 = vector.extract_strided_slice %49 {offsets = [0, 0], sizes = [32, 2], strides = [1, 1]} : vector<32x3xf32> to vector<32x2xf32>
    %cst_28 = arith.constant dense<0.000000e+00> : vector<32x1xf32>
    %51 = tpu.matmul %50, %48, %cst_28 {dimension_numbers = #tpu.dot_dimension_numbers<[1], [0], [0], [1], [0, 0, 1, 1], [], []>} : vector<32x2xf32>, vector<2x1xf32>, vector<32x1xf32> -> vector<32x1xf32>
    %52 = vector.extract_strided_slice %49 {offsets = [0, 2], sizes = [32, 1], strides = [1, 1]} : vector<32x3xf32> to vector<32x1xf32>
    %53 = arith.addf %51, %52 : vector<32x1xf32>
    %c0_29 = arith.constant 0 : index
    %c0_30 = arith.constant 0 : index
    %c0_31 = arith.constant 0 : index
    %54 = vector.load %arg1[%c0_29, %c0_30, %c0_31] : memref<1x32x256xf32, #tpu.memory_space<vmem>>, vector<1x32x256xf32>
    %55 = vector.shape_cast %54 : vector<1x32x256xf32> to vector<32x256xf32>
    %56 = vector.broadcast %53 : vector<32x1xf32> to vector<32x256xf32>
    %57 = arith.addf %55, %56 : vector<32x256xf32>
    %c0_32 = arith.constant 0 : index
    %c0_33 = arith.constant 0 : index
    %c0_34 = arith.constant 0 : index
    %58 = vector.load %arg7[%c0_32, %c0_33, %c0_34] : memref<1x32x256xf32, #tpu.memory_space<vmem>>, vector<1x32x256xf32>
    %59 = vector.shape_cast %58 : vector<1x32x256xf32> to vector<32x256xf32>
    %60 = vector.shape_cast %57 : vector<32x256xf32> to vector<1x32x256xf32>
    tpu.vector_store %arg7[%c0_32, %c0_33, %c0_34], %60 {strides = array<i32>} : memref<1x32x256xf32, #tpu.memory_space<vmem>>, vector<1x32x256xf32>,
    return
  }
  func.func @transform_0(%arg0: i32) -> (i32, i32, i32) {
    %c0_i32 = arith.constant 0 : i32
    %c0_i32_0 = arith.constant 0 : i32
    %c0_i32_1 = arith.constant 0 : i32
    return %arg0, %c0_i32, %c0_i32_0 : i32, i32, i32
  }
  func.func @transform_1(%arg0: i32) -> (i32, i32) {
    %c0_i32 = arith.constant 0 : i32
    %c0_i32_0 = arith.constant 0 : i32
    %c0_i32_1 = arith.constant 0 : i32
    return %c0_i32, %c0_i32_0 : i32, i32
  }
  func.func @transform_2(%arg0: i32) -> (i32, i32) {
    %c0_i32 = arith.constant 0 : i32
    %c0_i32_0 = arith.constant 0 : i32
    %c0_i32_1 = arith.constant 0 : i32
    return %c0_i32, %c0_i32_0 : i32, i32
  }
  func.func @transform_3(%arg0: i32) -> (i32, i32) {
    %c0_i32 = arith.constant 0 : i32
    %c0_i32_0 = arith.constant 0 : i32
    %c0_i32_1 = arith.constant 0 : i32
    return %c0_i32, %c0_i32_0 : i32, i32
  }
  func.func @transform_4(%arg0: i32) -> (i32, i32) {
    %c0_i32 = arith.constant 0 : i32
    %c0_i32_0 = arith.constant 0 : i32
    %c0_i32_1 = arith.constant 0 : i32
    return %c0_i32, %c0_i32_0 : i32, i32
  }
  func.func @transform_5(%arg0: i32) -> (i32, i32) {
    %c0_i32 = arith.constant 0 : i32
    %c0_i32_0 = arith.constant 0 : i32
    %c0_i32_1 = arith.constant 0 : i32
    return %c0_i32, %c0_i32_0 : i32, i32
  }
  func.func @transform_6(%arg0: i32) -> (i32, i32, i32) {
    %c0_i32 = arith.constant 0 : i32
    %c0_i32_0 = arith.constant 0 : i32
    %c0_i32_1 = arith.constant 0 : i32
    return %arg0, %c0_i32, %c0_i32_0 : i32, i32, i32
  }
}

</mosaic_0001>

<bundles_post_ra>
// kernel: tpu_custom_call.1
= control target key start
LH: loop header
LB: loop body
LE: loop exit
PB: predicated region body
PF: predicated region fallthrough
CT: control target
= control target key end

     0   :  { %s1237_s0 = inlined_call_operand.hbm [shape: f32[2,32,256], index: 0, kind: input, shape index: {}]   ;;  %s1238_s1 = inlined_call_operand.vmem [shape: f32[1,32], index: 1, kind: input, shape index: {}]   ;;  %s1239_s2 = inlined_call_operand.<no memory space> [shape: f32[1,1], index: 2, kind: input, shape index: {}]   ;;  %s1240_s3 = inlined_call_operand.vmem [shape: f32[2,33], index: 3, kind: input, shape index: {}]   ;;  %s1241_s4 = inlined_call_operand.vmem [shape: f32[32,3], index: 4, kind: input, shape index: {}]   ;;  %s1242_s5 = inlined_call_operand.vmem [shape: f32[2,2], index: 5, kind: input, shape index: {}]   ;;  %s1243_s6 = inlined_call_operand.hbm [shape: f32[2,32,256], index: 6, kind: output, shape index: {}]  }
   0x1   :  { %11 = sst [smem:[#allocation3]] %s1239_s2 }
   0x2   :  { %12 = vsyncpa [#allocation5], 0 }
   0x3   :  { %14 = vsyncpa [#allocation5 + $0x1], 0 }
   0x4   :  { %15 = vsyncpa [#allocation6], 0 }
   0x5   :  { %17 = vsyncpa [#allocation6 + $0x1], 0  ;;  %s1006_s23 = smov 0   ;;  %s1008_s24 = smov 0  }
   0x6   :  { %s1010_s25 = smov 0   ;;  %s1012_s26 = smov 0  }
   0x7 LB: > { %s1027_s2 = sadd.s32 4294967295, %s955_s26   ;;  %s742_s27 = sadd.s32 4294967294, %s955_s26   ;;  %s955_s26 = sphi %s1012_s26, %s1256_s26   ;;  %s951_s25 = sphi %s1010_s25, %s1255_s25   ;;  %s947_s24 = sphi %s1008_s24, %s1254_s24   ;;  %s943_s23 = sphi %s1006_s23, %s1253_s23  }
   0x8   : > { %s1031_s28 = sadd.s32 1, %s955_s26   ;;  %s30_s29 = sadd.s32 1, %s951_s25 }
   0x9   : > { %s27_s30 = ssub.s32 %s955_s26, %s1031_s28  ;;  %p37_p0 = scmp.ne.s32.totalorder %s951_s25, %s947_s24 }
   0xa   : > { %p28_p1 = scmp.eq.s32.totalorder %s27_s30, 0  ;;  %p38_p2 = scmp.eq.s32.totalorder %s955_s26, 0 }
   0xb   : > { %p43_p3 = scmp.ne.s32.totalorder %s947_s24, %s943_s23  ;;  %p44_p4 = scmp.eq.s32.totalorder %s1027_s2, 0 }
   0xc   : > { %s1043_s7 = scalar_select %p28_p1, %s951_s25, %s30_s29  }
   0xd   : > { %p1045_p5 = por %p38_p2, %p37_p0  ;;  %p1049_p6 = por %p44_p4, %p43_p3 }
   0xe   : > { %p172_p7 = scmp.eq.s32.totalorder %s1027_s2, 1  ;;  %p178_p8 = scmp.eq.s32.totalorder %s742_s27, 1 }
   0xf   : > { %p806_p10 = scmp.lt.s32.totalorder %s955_s26, 2  ;;  %s213_s12 = sand.u32 1, %s951_s25  }
  0x10   : > { %p1056_p11 = por %p172_p7, %p37_p0  ;;  %p1060_p12 = por %p178_p8, %p43_p3 }
  0x11   : > { %s763_s13 = sshll.u32 %s955_s26, 10  ;;  %s745_s14 = sshll.u32 %s213_s12, 6 }
  0x12   : > { %s1247_s10 = scalar_select %p1056_p11, 1, 0 }
  0x13   : > { %s1248_s11 = scalar_select %p1060_p12, 1, 0 }
  0x14   : > { %s1069_s17 = scalar_lea.hbm %s1237_s0, %s763_s13  ;;  %s217_s18 = scalar_lea.vmem [#allocation4], %s745_s14 }
  0x15   : > { %s224_s19 = sshll.u32 %s217_s18, 4  ;;  %p1073_p13 = pnand %p806_p10, %p1045_p5  ;;  %s1077_s19 = int_to_ptr.vmem [resolvable:$true] %s224_s19 }
  0x16   : > { %s1079_s21 = scalar_lea.sflag [#allocation5], %s213_s12  ;;  %s859_s22 = scalar_lea.hbm %s1069_s17, 1024 }
  0x17   : > { %p860_p0 = scmp.ne.s32.totalorder %s1069_s17, %s859_s22  ;;  %p861_p1 = pneg %p1073_p13 }
  0x18   : > { %s864_s30 = scalar_lea.hbm %s1237_s0, 2048  ;;  %p865_p4 = scmp.lt.u32.totalorder %s1069_s17, %s1237_s0 }
  0x19   : > { %p862_p2 = pnand %p861_p1, %p860_p0  ;;  %p866_p5 = scmp.lt.u32.totalorder %s864_s30, %s859_s22 }
  0x1a   : > { %p868_p8 = scmp.lt.u32.totalorder %s859_s22, %s1069_s17 }
  0x1b   : > { %p863_p3 = pneg %p862_p2  ;;  %p867_p7 = por %p866_p5, %p865_p4 }
  0x1d   : > { %p869_p10 = por %p868_p8, %p867_p7 }
  0x1f   : > { %p870_p9 = pnand %p869_p10, %p863_p3 }
  0x21   : > { %873 = shalt.err (!%p870_p9)
}
  0x22   : > { %s874_s12 = scalar_lea.vmem %s1077_s19, 1024  ;;  %s957_s14 = smov [#allocation4]  }
  0x23   : > { %p875_p0 = scmp.ne.s32.totalorder %s1077_s19, %s874_s12  ;;  %s879_s15 = sshll.u32 %s957_s14, 4  ;;  %s880_s15 = int_to_ptr.vmem [resolvable:$false] %s879_s15 }
  0x24   : > { %s881_s16 = scalar_lea.vmem %s880_s15, 2048  ;;  %p882_p11 = scmp.lt.s32.totalorder %s1077_s19, %s880_s15 }
  0x25   : > { %p877_p2 = pnand %p875_p0, %p861_p1  ;;  %p883_p4 = scmp.lt.s32.totalorder %s881_s16, %s874_s12 }
  0x27   : > { %p878_p12 = pneg %p877_p2  ;;  %p884_p5 = por %p883_p4, %p882_p11 }
  0x29   : > { %p885_p7 = pnand %p884_p5, %p878_p12 }
  0x2b   : > { %888 = shalt.err (!%p885_p7)
}
  0x2c   : > { %s958_s18 = smov 256   ;;  %s959_s22 = smov 16  }
  0x2d   : > { %801 = dma.hbm_to_vmem [thread:$0]  (!%p1073_p13), %s1069_s17, 1024, %s1077_s19, %s1079_s21, %s958_s18, %s958_s18, %s959_s22  }
  0x2e   : > { %p748_p9 = scmp.ge.s32.totalorder %s955_s26, 1  ;;  %p232_p1 = scmp.lt.s32.totalorder %s955_s26, 3 }
  0x30   : > { %p233_p3 = pnand %p748_p9, %p232_p1 }
  0x31   : > { %s1110_s27 = sand.u32 (!%p233_p3), 1, %s947_s24  }
  0x32   : > { %236 = sbr.rel (%p233_p3) target bundleno = 1235 (0x4d3), region = 44  ;;  %s749_s29 = sshll.u32 (!%p233_p3), %s1110_s27, 6 }
  0x33   : > { %s239_s30 = scalar_lea.sflag (!%p233_p3), [#allocation5], %s1110_s27  ;;  %s242_s8 = scalar_lea.vmem (!%p233_p3), [#allocation4], %s749_s29 }
  0x39   : > { %934 = dma.done.wait (%p1049_p6), %s239_s30, 1024  }
  0x3a   : > { %936 = vsyncadd (%p1049_p6), %s239_s30, 4294966272  ;;  %v960_v0 = vmov 0.0   ;;  %v1120_v1 = vld [vmem:[%s242_s8 + $0x8] sm:$0xff]  ;;  %v1122_v2 = vld [vmem:[%s242_s8 + $0x18] sm:$0xff]  ;;  %vm284_vm0 = vcmask 261120   ;;  %s271_s19 = sld [smem:[#allocation3]] }
  0x3b   : > { %352 = vmatprep.mubr.f32.mxu0 %v960_v0  ;;  %v1124_v3 = vld [vmem:[%s242_s8] sm:$0xff]  ;;  %v778_v4 = vpack.c.bf16 %v1122_v2, %v1120_v1  ;;  %v1128_v5 = vld [vmem:[%s242_s8 + $0x10] sm:$0xff]  ;;  %v1130_v6 = vld [vmem:[%s242_s8 + $0x28] sm:$0xff]  ;;  %vm359_vm1 = vcmask 1040384   ;;  %vm273_vm2 = vcmask 262400   ;;  %v961_v32 = vmov 1.0  }
  0x3c   : > { %v1132_v7 = vld [vmem:[%s242_s8 + $0x38] sm:$0xff]  ;;  %v780_v8 = vpack.c.bf16 %v1128_v5, %v1124_v3  ;;  %v1138_v10 = vld [vmem:[%s242_s8 + $0x20] sm:$0xff]  ;;  %v1140_v11 = vld [vmem:[%s242_s8 + $0x30] sm:$0xff]  ;;  %274 = vst.msk [vmem:[#allocation2] sm:$0x1] %vm273_vm2, %v961_v32  ;;  %vm448_vm3 = vcmask 253952  }
  0x3d   : > { %v782_v9 = vpack.c.bf16 %v1132_v7, %v1130_v6  ;;  %779 = vmatprep.subr.bf16.mxu0 %v778_v4  ;;  %787 = vmatprep.subr.bf16.mxu1 %v778_v4  ;;  %v784_v12 = vpack.c.bf16 %v1140_v11, %v1138_v10  ;;  %v272_v13 = vld [vmem:[%s1238_s1] sm:$0x1]  ;;  %vm459_vm4 = vcmask 263168   ;;  %s962_s14 = smov 127   ;;  %vm514_vm5 = vcmask 15360   ;;  %v495_v44 = vld [vmem:[%s1241_s4 + $0x8] sm:$0xff] }
  0x3e   : > { %781 = vmatpush1.bf16.msra.mxu0 %v780_v8  ;;  %789 = vmatpush1.bf16.xpose.msra.mxu1 %v780_v8  ;;  %v451_v38 = vld [vmem:[%s1240_s3] sm:$0x3]  ;;  %s963_s30 = smov 126   ;;  %v496_v45 = vld [vmem:[%s1241_s4 + $0x10] sm:$0xff]  ;;  %v497_v46 = vld [vmem:[%s1241_s4 + $0x18] sm:$0xff]  ;;  %vm463_vm6 = vcmask 1041408  }
  0x3f   : > { %783 = vmatprep.subr.bf16.mxu0 %v782_v9  ;;  %791 = vmatprep.subr.bf16.mxu1 %v782_v9  ;;  %v486_v42 = vld [vmem:[%s1242_s5] sm:$0x3]  ;;  %s270_s20 = scalar_lea.vmem [#allocation7], %s749_s29  ;;  %s764_s13 = sshll.u32 %s1027_s2, 10 }
  0x40   : > { %v283_v14 = vstv %s271_s19  ;;  %v494_v43 = vld [vmem:[%s1241_s4] sm:$0xff]  ;;  %s669_s21 = sshll.u32 %s270_s20, 4  ;;  %s656_s2 = scalar_lea.sflag [#allocation6], %s1110_s27  ;;  %s1184_s21 = int_to_ptr.vmem [resolvable:$true] %s669_s21 }
  0x41   : > { %s889_s15 = scalar_lea.vmem %s1184_s21, 1024  ;;  %p1250_p11 = scmp.ne.s32.totalorder %s1247_s10, 0 }
  0x42   : > { %785 = vmatpush1.bf16.msra.mxu0 %v784_v12  ;;  %p890_p6 = scmp.ne.s32.totalorder %s1184_s21, %s889_s15  ;;  %s965_s16 = smov [#allocation7]  }
  0x43   : > { %s893_s18 = sshll.u32 %s965_s16, 4  ;;  %s894_s18 = int_to_ptr.vmem [resolvable:$false] %s893_s18 }
  0x44   : > { %p891_p12 = pnand %p890_p6, %p1250_p11  ;;  %s895_s22 = scalar_lea.vmem %s894_s18, 2048 }
  0x45   : > { %751 = vmatmul.mubr.msk.f32.vlgmr.msra.gmra.mrb[0].mxu0 %vm284_vm0, %v272_v13  ;;  %p896_p8 = scmp.lt.s32.totalorder %s1184_s21, %s894_s18  ;;  %p897_p10 = scmp.lt.s32.totalorder %s895_s22, %s889_s15 }
  0x46   : > { %793 = vmatpush1.bf16.xpose.msra.mxu1 %v784_v12  ;;  %772 = vmatprep.mubr.msk.f32.mxu0 %vm514_vm5, %v494_v43  ;;  %p892_p13 = pneg %p891_p12 }
  0x47   : > { %p898_p0 = por %p897_p10, %p896_p8 }
  0x49   : > { %p899_p2 = pnand %p898_p0, %p892_p13 }
 0x118   : > { %v354_v15 = vpop.f32.mrb[0].mxu0 }
 0x119   : > { %v355_v16 = vadd.f32 %v354_v15, %v283_v14  ;;  %v356_v17 = vpop.f32.mrb[1].mxu0 }
 0x11a   : > { %v357_v18 = vadd.f32 %v356_v17, %v283_v14  ;;  %v964_v17 = vmov 0  }
 0x11b   : > { %v360_v19 = vsel %vm359_vm1, %v355_v16, -inf  ;;  %849 = vset.pattern.permute.xlu1 %v964_v17  ;;  %850 = vset.pattern.permute.xlu0 %v964_v17 }
 0x11c   : > { %v361_v20 = vsel %vm359_vm1, %v357_v18, -inf }
 0x11d   : > { %v362_v21 = vmax.f32 %v360_v19, %v361_v20 }
 0x11f   : > { %363 = vmax.xlane.f32.xlu0 %v362_v21 }
 0x1ac   : > { %v364_v22 = vpop.xlane.xlu0 %363 }
 0x1ad   : > { %v365_v23 = vsub.f32 %v355_v16, %v364_v22  ;;  %v366_v24 = vsub.f32 %v357_v18, %v364_v22 }
 0x1af   : > { %v367_v25 = vmul.f32 1.442695, %v365_v23  ;;  %v369_v26 = vmul.f32 1.442695, %v366_v24 }
 0x1b1   : > { %851 = vpow2.f32 %v367_v25 }
 0x1b2   : > { %853 = vpow2.f32 %v369_v26 }
 0x1bb   : > { %v852_v27 = vpop.eup %851 }
 0x1bc   : > { %v854_v28 = vpop.eup %853  ;;  %v371_v29 = vsel %vm359_vm1, %v852_v27, 0.0 }
 0x1bd   : > { %440 = vmatprep.mubr.f32.mxu1 %v854_v28  ;;  %v372_v30 = vsel %vm359_vm1, %v854_v28, 0.0 }
 0x1be   : > { %441 = vmatmul.mubr.f32.vlgmr.msra.gmra.mrb[0].mxu1 %v852_v27  ;;  %v373_v31 = vadd.f32 %v372_v30, %v371_v29 }
 0x1c0   : > { %374 = vadd.xlane.f32.xlu0 %v373_v31 }
 0x1d6   : > { %502 = vrot.lane.b32.xlu0 %v494_v43, %s963_s30 }
 0x24d   : > { %v375_v33 = vpop.xlane.xlu0 %374 }
 0x24e   : > { %855 = vrcp.f32 %v375_v33 }
 0x251   : > { %v503_v20 = vpop.permute.xlu0 %502 }
 0x258   : > { %v856_v34 = vpop.eup %855 }
 0x291   : > { %v442_v35 = vpop.f32.mrb[0].mxu1 }
 0x292   : > { %v447_v36 = vmul.f32 %v856_v34, %v442_v35  ;;  %v444_v37 = vpop.f32.mrb[1].mxu1 }
 0x294   : > { %449 = vst.msk [vmem:[#allocation2] sm:$0x1] %vm448_vm3, %v447_v36 }
 0x29b   : > { %v752_v39 = vld [vmem:[#allocation2] ss:$0 sm:$0xff] }
 0x29c   : > { %v458_v40 = vmul.f32 %v752_v39, %v451_v38 }
 0x29e   : > { %v460_v41 = vsel %vm459_vm4, %v458_v40, 0.0 }
 0x29f   : > { %461 = vadd.xlane.f32.xlu1 %v460_v41 }
 0x2b0   : > { %489 = vrot.lane.b32.xlu1 %v486_v42, %s962_s14  ;;  %s1189_s14 = scalar_lea.hbm %s1243_s6, %s764_s13 }
 0x2b4   : > { %504 = vrot.lane.b32.xlu1 %v495_v44, %s963_s30 }
 0x2b8   : > { %506 = vrot.lane.b32.xlu1 %v496_v45, %s963_s30 }
 0x2bc   : > { %508 = vrot.lane.b32.xlu1 %v497_v46, %s963_s30 }
 0x32c   : > { %v462_v47 = vpop.xlane.xlu1 %461 }
 0x32d   : > { %v464_v48 = vsel %vm463_vm6, %v462_v47, 0.0 }
 0x32e   : > { %v465_v49 = vrot.slane %v464_v48, 4 }
 0x330   : > { %v466_v50 = vadd.f32 %v465_v49, %v464_v48  ;;  %v490_v13 = vpop.permute.xlu1 %489 }
 0x332   : > { %v467_v51 = vrot.slane %v466_v50, 2 }
 0x334   : > { %v468_v52 = vadd.f32 %v467_v51, %v466_v50  ;;  %v505_v18 = vpop.permute.xlu1 %504 }
 0x336   : > { %v469_v53 = vrot.slane %v468_v52, 1 }
 0x338   : > { %v470_v54 = vadd.f32 %v469_v53, %v468_v52  ;;  %v507_v19 = vpop.permute.xlu1 %506 }
 0x33a   : > { %v472_v55 = vmul.f32 0.5, %v470_v54 }
 0x33c   : > { %v473_v56 = vsub.f32 %v462_v47, %v472_v55  ;;  %v509_v25 = vpop.permute.xlu1 %508 }
 0x33e   : > { %v474_v57 = vmul.f32 %v473_v56, %v473_v56 }
 0x340   : > { %v475_v58 = vsel %vm463_vm6, %v474_v57, 0.0 }
 0x341   : > { %v476_v59 = vrot.slane %v475_v58, 4 }
 0x343   : > { %v477_v60 = vadd.f32 %v476_v59, %v475_v58 }
 0x345   : > { %v478_v61 = vrot.slane %v477_v60, 2 }
 0x347   : > { %v479_v62 = vadd.f32 %v478_v61, %v477_v60 }
 0x349   : > { %v480_v63 = vrot.slane %v479_v62, 1 }
 0x34b   : > { %v481_v0 = vadd.f32 %v480_v63, %v479_v62 }
 0x34d   : > { %v482_v4 = vmul.f32 0.5, %v481_v0 }
 0x34f   : > { %v483_v8 = vadd.f32 1e-05, %v482_v4 }
 0x351   : > { %857 = vrsqrt.f32 %v483_v8 }
 0x35b   : > { %v858_v9 = vpop.eup %857 }
 0x35c   : > { %v485_v12 = vmul.f32 %v858_v9, %v473_v56 }
 0x35e   : > { %v487_v14 = vmul.f32 %v486_v42, %v485_v12 }
 0x360   : > { %v492_v15 = vadd.f32 %v490_v13, %v487_v14 }
 0x362   : > { %v493_v16 = vmax.f32 %v492_v15, 0.0 }
 0x364   : > { %770 = vmatprep.subr.msk.mxu0 %vm463_vm6, %v493_v16 }
 0x365   : > { %771 = vmatpush3.msk.msra.mxu0 %vm463_vm6, %v493_v16 }
 0x366   : > { %773 = vmatmul.mubr.msk.f32.vlgmr.msra.gmra.mrb[2].mxu0 %vm514_vm5, %v495_v44 }
 0x367   : > { %775 = vmatprep.mubr.msk.f32.mxu0 %vm514_vm5, %v496_v45 }
 0x36a   : > { %776 = vmatmul.mubr.msk.f32.gmra.mrb[4].mxu0 %vm514_vm5, %v497_v46 }
 0x439   : > { %v774_v21 = vpop.f32.mrb[2].mxu0 }
 0x43a   : > { %v598_v22 = vadd.f32 %v774_v21, %v505_v18  ;;  %v592_v23 = vpop.f32.mrb[3].mxu0 }
 0x43b   : > { %v593_v24 = vadd.f32 %v592_v23, %v503_v20 }
 0x43c   : > { %626 = vperm.xlu1 %849, %v598_v22  }
 0x43d   : > { %v777_v26 = vpop.f32.mrb[4].mxu0  ;;  %621 = vperm.xlu0 %850, %v593_v24  }
 0x43e   : > { %v602_v27 = vpop.f32.mrb[5].mxu0  ;;  %v608_v28 = vadd.f32 %v777_v26, %v509_v25 }
 0x43f   : > { %v603_v29 = vadd.f32 %v602_v27, %v507_v19 }
 0x441   : > { %631 = vperm.xlu1 %849, %v603_v29   ;;  %636 = vperm.xlu0 %850, %v608_v28  }
 0x4bb   : > { %v627_v30 = vpop.permute.xlu1 %626 }
 0x4bc   : > { %v641_v31 = vadd.f32 %v627_v30, %v1128_v5  ;;  %v642_v32 = vadd.f32 %v627_v30, %v1122_v2  ;;  %v622_v33 = vpop.permute.xlu0 %621 }
 0x4bd   : > { %v639_v34 = vadd.f32 %v622_v33, %v1124_v3  ;;  %v640_v35 = vadd.f32 %v622_v33, %v1120_v1 }
 0x4be   : > { %649 = vst [vmem:[%s270_s20 + $0x10] sm:$0xff] %v641_v31  ;;  %650 = vst [vmem:[%s270_s20 + $0x18] sm:$0xff] %v642_v32 }
 0x4bf   : > { %647 = vst [vmem:[%s270_s20] sm:$0xff] %v639_v34  ;;  %648 = vst [vmem:[%s270_s20 + $0x8] sm:$0xff] %v640_v35 }
 0x4c0   : > { %v632_v36 = vpop.permute.xlu1 %631  ;;  %v637_v5 = vpop.permute.xlu0 %636 }
 0x4c1   : > { %v643_v1 = vadd.f32 %v632_v36, %v1138_v10  ;;  %v644_v2 = vadd.f32 %v632_v36, %v1130_v6  ;;  %v645_v3 = vadd.f32 %v637_v5, %v1140_v11  ;;  %v646_v37 = vadd.f32 %v637_v5, %v1132_v7 }
 0x4c3   : > { %651 = vst [vmem:[%s270_s20 + $0x20] sm:$0xff] %v643_v1  ;;  %652 = vst [vmem:[%s270_s20 + $0x28] sm:$0xff] %v644_v2 }
 0x4c4   : > { %653 = vst [vmem:[%s270_s20 + $0x30] sm:$0xff] %v645_v3  ;;  %654 = vst [vmem:[%s270_s20 + $0x38] sm:$0xff] %v646_v37 }
 0x4c5   : > { %902 = shalt.err (!%p899_p2)
}
 0x4c6   : > { %s903_s30 = scalar_lea.hbm %s1189_s14, 1024  ;;  %s907_s17 = scalar_lea.hbm %s1243_s6, 2048 }
 0x4c7   : > { %p904_p4 = scmp.ne.s32.totalorder %s1189_s14, %s903_s30  ;;  %p908_p9 = scmp.lt.u32.totalorder %s1189_s14, %s1243_s6 }
 0x4c8   : > { %p909_p1 = scmp.lt.u32.totalorder %s907_s17, %s903_s30  ;;  %p911_p6 = scmp.lt.u32.totalorder %s903_s30, %s1189_s14 }
 0x4c9   : > { %p905_p5 = pnand %p904_p4, %p1250_p11 }
 0x4ca   : > { %p910_p3 = por %p909_p1, %p908_p9 }
 0x4cb   : > { %p906_p7 = pneg %p905_p5 }
 0x4cc   : > { %p912_p12 = por %p911_p6, %p910_p3 }
 0x4ce   : > { %p913_p13 = pnand %p912_p12, %p906_p7 }
 0x4d0   : > { %916 = shalt.err (!%p913_p13)
}
 0x4d1   : > { %s966_s13 = smov 256   ;;  %s967_s29 = smov 16  }
 0x4d2   : > { %796 = dma.vmem_to_hbm [thread:$0]  (%p1250_p11), %s1184_s21, 1024, %s1189_s14, %s656_s2, %s966_s13, %s966_s13, %s967_s29  }
 0x4d3 PF: > { %s684_s12 = sand.u32 1, %s943_s23   ;;  %p1251_p8 = scmp.ne.s32.totalorder %s1248_s11, 0 }
 0x4d4   : > { %p1252_p10 = scmp.ge.s32.totalorder %s955_s26, 2  ;;  %s685_s15 = scalar_lea.sflag [#allocation6], %s684_s12 }
 0x4d6   : > { %p803_p0 = pnand %p1252_p10, %p1251_p8 }
 0x4d8   : > { %938 = dma.done.wait (!%p803_p0), %s685_s15, 1024  }
 0x4d9   : > { %940 = vsyncadd (!%p803_p0), %s685_s15, 4294966272  ;;  %p20_p2 = scmp.ge.s32.totalorder %s1031_s28, 4   ;;  %s1253_s23 = smov %s947_s24 }
 0x4da   : > { %s1254_s24 = smov %s951_s25  ;;  %s1255_s25 = smov %s1043_s7 }
 0x4db   : > { %s1256_s26 = smov %s1031_s28  ;;  %22 = sbr.rel (!%p20_p2) target bundleno = 7 (0x7), region = 89 }
 0x4e2   :  { %690 = vsyncpa [#allocation5], 1 }
 0x4e3   :  { %692 = vsyncpa [#allocation5 + $0x1], 1 }
 0x4e4   :  { %693 = vsyncpa [#allocation6], 1 }
 0x4e5   :  { %695 = vsyncpa [#allocation6 + $0x1], 1 }

</bundles_post_ra>
